<compile_context>
chip_gen: v6e
topology: v6e:2x2x1
jax: 0.10.0
libtpu: 0.0.40
codegen_flags: <defaults>
</compile_context>

<pallas_src>
import functools
import math

import jax
import jax.numpy as jnp
import numpy as np
from jax.experimental import pallas as pl
from jax.experimental.pallas import tpu as pltpu


def tiny_attention_kernel(x_ref, p_ref, o_ref, *,
                          B, N, d_in, d_attn, d_out, wp_off, bias_row, scale):
    three = 3 * d_attn

    x = x_ref[...]            # [B*N, d_in]
    P = p_ref[...]            # [bias_row + 1, wp_off + d_out] packed parameter slab

    wqkv = P[:d_in, :three]                                  # [d_in, 3*d_attn]
    bqkv = P[bias_row:bias_row + 1, :three]                  # [1, 3*d_attn]
    wproj = P[:d_attn, wp_off:wp_off + d_out]                # [d_attn, d_out]
    bproj = P[bias_row:bias_row + 1, wp_off:wp_off + d_out]  # [1, d_out]

    # Single fused qkv projection: [B*N, 3*d_attn] (one wide MXU push on v6e/v7x).
    qkv = jnp.dot(x, wqkv, preferred_element_type=jnp.float32) + bqkv

    # Split q/k/v in-kernel; [q|k|v] order keeps slices at 64/128-lane offsets.
    q = qkv[:, :d_attn].reshape(B, N, d_attn)
    k = qkv[:, d_attn:2 * d_attn].reshape(B, N, d_attn)
    v = qkv[:, 2 * d_attn:three].reshape(B, N, d_attn)

    # w[b, n, m] = sum_d q[b, n, d] * k[b, m, d], scaled by 1/sqrt(d_attn)
    # (scale is a Python float -> compile-time constant multiply).
    w = jnp.einsum('bnd,bmd->bnm', q, k,
                   preferred_element_type=jnp.float32) * scale

    # nn.Softmax() implicit dim -> dim 0 (batch axis) for a 3-D tensor.
    m = jnp.max(w, axis=0, keepdims=True)
    e = jnp.exp(w - m)
    denom = jnp.sum(e, axis=0, keepdims=True)
    a = e * pl.reciprocal(denom, approx=True)   # EUP reciprocal, ~free slot

    ctx = jnp.einsum('bnm,bmd->bnd', a, v, preferred_element_type=jnp.float32)

    out = (jnp.dot(ctx.reshape(B * N, d_attn), wproj,
                   preferred_element_type=jnp.float32) + bproj)

    # Flat (B*N, d_out) store -- no in-kernel sublane->lane relayout.
    o_ref[...] = out.astype(o_ref.dtype)


def tiny_attention(x, wqkv, bqkv, wproj, bproj):
    """x: [B, N, d_in]; wqkv: [d_in, 3*d_attn]; bqkv: [3*d_attn];
       wproj: [d_attn, d_out]; bproj: [d_out]."""
    B, N, d_in = x.shape
    three = wqkv.shape[1]
    d_attn = three // 3
    d_out = wproj.shape[1]
    dtype = x.dtype

    # --- pack all parameters into one slab (in production, build this once at init).
    wp_off = ((three + 127) // 128) * 128          # proj block starts lane-aligned (256)
    n_wrows = max(d_in, d_attn)                    # weight rows (64)
    bias_row = n_wrows                             # biases live in one extra row
    P = jnp.zeros((bias_row + 1, wp_off + d_out), dtype)
    P = P.at[:d_in, :three].set(wqkv.astype(dtype))
    P = P.at[:d_attn, wp_off:wp_off + d_out].set(wproj.astype(dtype))
    P = P.at[bias_row, :three].set(bqkv.astype(dtype))
    P = P.at[bias_row, wp_off:wp_off + d_out].set(bproj.astype(dtype))

    # Wrapper-side reshape is a free XLA metadata op; keep the kernel slab flat.
    x2 = x.reshape(B * N, d_in)

    flops = (2 * B * N * d_in * three               # qkv projection
             + 2 * B * N * N * d_attn               # q @ k^T
             + 2 * B * N * N * d_attn               # a @ v
             + 2 * B * N * d_attn * d_out)          # output projection
    itemsize = jnp.dtype(dtype).itemsize
    bytes_accessed = itemsize * (x2.size + P.size + B * N * d_out)
    cost = pl.CostEstimate(flops=flops,
                           transcendentals=B * N * N,
                           bytes_accessed=bytes_accessed)

    vmem = pl.BlockSpec(memory_space=pltpu.MemorySpace.VMEM)
    kernel = functools.partial(tiny_attention_kernel, B=B, N=N, d_in=d_in,
                               d_attn=d_attn, d_out=d_out, wp_off=wp_off,
                               bias_row=bias_row, scale=1.0 / math.sqrt(d_attn))

    out2 = pl.pallas_call(
        kernel,
        out_shape=jax.ShapeDtypeStruct((B * N, d_out), dtype),
        in_specs=[vmem, vmem],
        out_specs=vmem,
        cost_estimate=cost,
    )(x2, P)

    # Free metadata reshape back to the module's output layout.
    return out2.reshape(B, N, d_out)


def tiny_attention_ref(x, wqkv, bqkv, wproj, bproj):
    d_attn = wqkv.shape[1] // 3
    qkv = x @ wqkv + bqkv
    q, k, v = jnp.split(qkv, 3, axis=-1)
    w = jnp.einsum('bnd,bmd->bnm', q, k)
    a = jax.nn.softmax(w * jax.lax.rsqrt(jnp.float32(d_attn)), axis=0)
    ctx = jnp.einsum('bnm,bmd->bnd', a, v)
    return ctx @ wproj + bproj


if __name__ == "__main__":
    B, N, d_in, d_attn = 2, 8, 32, 64
    d_out = d_in  # d_out defaults to d_in in the module

    key = jax.random.PRNGKey(0)
    kx, kw1, kb1, kw2, kb2 = jax.random.split(key, 5)

    x = jax.random.normal(kx, (B, N, d_in), dtype=jnp.float32) * 0.1
    # Deterministic synthetic parameters
    # (shapes from nn.Linear(d_in, 3*d_attn) and nn.Linear(d_attn, d_out)).
    wqkv = jax.random.normal(kw1, (d_in, 3 * d_attn), dtype=jnp.float32) * 0.1
    bqkv = jax.random.normal(kb1, (3 * d_attn,), dtype=jnp.float32) * 0.1
    wproj = jax.random.normal(kw2, (d_attn, d_out), dtype=jnp.float32) * 0.1
    bproj = jax.random.normal(kb2, (d_out,), dtype=jnp.float32) * 0.1

    out = tiny_attention(x, wqkv, bqkv, wproj, bproj)
    out = jax.block_until_ready(out)

    ref = tiny_attention_ref(x, wqkv, bqkv, wproj, bproj)
    np.testing.assert_allclose(np.asarray(out), np.asarray(ref), rtol=1e-2, atol=1e-2)

    print("KERNEL_OK")
</pallas_src>

<mosaic_0001>
module attributes {stable_mosaic.version = 11 : i64} {
  func.func @tiny_attention_kernel(%arg0: memref<16x32xf32, #tpu.memory_space<vmem>>, %arg1: memref<65x288xf32, #tpu.memory_space<vmem>>, %arg2: memref<16x32xf32, #tpu.memory_space<vmem>>) attributes {dimension_semantics = [], scalar_prefetch = 0 : i64, scratch_operands = 0 : i64, tpu.core_type = #tpu.core_type<tc>} {
    %c0 = arith.constant 0 : index
    %c0_0 = arith.constant 0 : index
    %0 = vector.load %arg0[%c0, %c0_0] : memref<16x32xf32, #tpu.memory_space<vmem>>, vector<16x32xf32>
    %c0_1 = arith.constant 0 : index
    %c0_2 = arith.constant 0 : index
    %1 = vector.load %arg1[%c0_1, %c0_2] : memref<65x288xf32, #tpu.memory_space<vmem>>, vector<65x288xf32>
    %2 = vector.extract_strided_slice %1 {offsets = [0, 0], sizes = [32, 192], strides = [1, 1]} : vector<65x288xf32> to vector<32x192xf32>
    %3 = vector.extract_strided_slice %1 {offsets = [64, 0], sizes = [1, 192], strides = [1, 1]} : vector<65x288xf32> to vector<1x192xf32>
    %4 = vector.extract_strided_slice %1 {offsets = [0, 256], sizes = [64, 32], strides = [1, 1]} : vector<65x288xf32> to vector<64x32xf32>
    %5 = vector.extract_strided_slice %1 {offsets = [64, 256], sizes = [1, 32], strides = [1, 1]} : vector<65x288xf32> to vector<1x32xf32>
    %cst = arith.constant dense<0.000000e+00> : vector<16x192xf32>
    %6 = tpu.matmul %0, %2, %cst {dimension_numbers = #tpu.dot_dimension_numbers<[1], [0], [0], [1], [0, 0, 1, 1], [], []>} : vector<16x32xf32>, vector<32x192xf32>, vector<16x192xf32> -> vector<16x192xf32>
    %7 = vector.broadcast %3 : vector<1x192xf32> to vector<16x192xf32>
    %8 = arith.addf %6, %7 : vector<16x192xf32>
    %9 = vector.extract_strided_slice %8 {offsets = [0, 0], sizes = [16, 64], strides = [1, 1]} : vector<16x192xf32> to vector<16x64xf32>
    %10 = vector.shape_cast %9 : vector<16x64xf32> to vector<2x8x64xf32>
    %11 = vector.extract_strided_slice %8 {offsets = [0, 64], sizes = [16, 64], strides = [1, 1]} : vector<16x192xf32> to vector<16x64xf32>
    %12 = vector.shape_cast %11 : vector<16x64xf32> to vector<2x8x64xf32>
    %13 = vector.extract_strided_slice %8 {offsets = [0, 128], sizes = [16, 64], strides = [1, 1]} : vector<16x192xf32> to vector<16x64xf32>
    %14 = vector.shape_cast %13 : vector<16x64xf32> to vector<2x8x64xf32>
    "tpu.trace_start"() <{level = 10 : i32, message = "bnd,bmd->bnm"}> : () -> ()
    %cst_3 = arith.constant dense<0.000000e+00> : vector<2x8x8xf32>
    %15 = tpu.matmul %10, %12, %cst_3 {dimension_numbers = #tpu.dot_dimension_numbers<[2], [2], [1], [1], [0, 0, 0, 1, 1, 1], [0], [0]>} : vector<2x8x64xf32>, vector<2x8x64xf32>, vector<2x8x8xf32> -> vector<2x8x8xf32>
    "tpu.trace_stop"() : () -> ()
    %cst_4 = arith.constant 1.250000e-01 : f32
    %16 = vector.broadcast %cst_4 : f32 to vector<2x8x8xf32>
    %17 = arith.mulf %15, %16 : vector<2x8x8xf32>
    %cst_5 = arith.constant dense<0xFF800000> : vector<8x8xf32>
    %18 = vector.multi_reduction <maximumf>, %17, %cst_5 [0] : vector<2x8x8xf32> to vector<8x8xf32>
    %19 = vector.shape_cast %18 : vector<8x8xf32> to vector<1x8x8xf32>
    %20 = vector.broadcast %19 : vector<1x8x8xf32> to vector<2x8x8xf32>
    %21 = arith.subf %17, %20 : vector<2x8x8xf32>
    %22 = math.exp %21 : vector<2x8x8xf32>
    %cst_6 = arith.constant dense<0.000000e+00> : vector<8x8xf32>
    %23 = vector.multi_reduction <add>, %22, %cst_6 [0] : vector<2x8x8xf32> to vector<8x8xf32>
    %24 = vector.shape_cast %23 : vector<8x8xf32> to vector<1x8x8xf32>
    %25 = tpu.reciprocal %24 {approx = true} : vector<1x8x8xf32> -> vector<1x8x8xf32>
    %26 = vector.broadcast %25 : vector<1x8x8xf32> to vector<2x8x8xf32>
    %27 = arith.mulf %22, %26 : vector<2x8x8xf32>
    "tpu.trace_start"() <{level = 10 : i32, message = "bnm,bmd->bnd"}> : () -> ()
    %cst_7 = arith.constant dense<0.000000e+00> : vector<2x8x64xf32>
    %28 = tpu.matmul %27, %14, %cst_7 {dimension_numbers = #tpu.dot_dimension_numbers<[2], [1], [1], [2], [0, 0, 0, 1, 1, 2], [0], [0]>} : vector<2x8x8xf32>, vector<2x8x64xf32>, vector<2x8x64xf32> -> vector<2x8x64xf32>
    "tpu.trace_stop"() : () -> ()
    %29 = vector.shape_cast %28 : vector<2x8x64xf32> to vector<16x64xf32>
    %cst_8 = arith.constant dense<0.000000e+00> : vector<16x32xf32>
    %30 = tpu.matmul %29, %4, %cst_8 {dimension_numbers = #tpu.dot_dimension_numbers<[1], [0], [0], [1], [0, 0, 1, 1], [], []>} : vector<16x64xf32>, vector<64x32xf32>, vector<16x32xf32> -> vector<16x32xf32>
    %31 = vector.broadcast %5 : vector<1x32xf32> to vector<16x32xf32>
    %32 = arith.addf %30, %31 : vector<16x32xf32>
    %c0_9 = arith.constant 0 : index
    %c0_10 = arith.constant 0 : index
    %33 = vector.load %arg2[%c0_9, %c0_10] : memref<16x32xf32, #tpu.memory_space<vmem>>, vector<16x32xf32>
    tpu.vector_store %arg2[%c0_9, %c0_10], %32 {strides = array<i32>} : memref<16x32xf32, #tpu.memory_space<vmem>>, vector<16x32xf32>,
    return
  }
}

</mosaic_0001>

<bundles_post_ra>
// kernel: tpu_custom_call.1
= control target key start
LH: loop header
LB: loop body
LE: loop exit
PB: predicated region body
PF: predicated region fallthrough
CT: control target
= control target key end

     0   :  { %7 = vsyncpa [#allocation3], 0  ;;  %s789_s0 = inlined_call_operand.hbm [shape: f32[16,32], index: 0, kind: input, shape index: {}]   ;;  %s790_s1 = inlined_call_operand.hbm [shape: f32[65,288], index: 1, kind: input, shape index: {}]   ;;  %s791_s2 = inlined_call_operand.hbm [shape: f32[16,32], index: 2, kind: output, shape index: {}]  }
   0x1   :  { %8 = vsyncpa [#allocation6], 0 }
   0x2   :  { %9 = vsyncpa [#allocation4], 0  ;;  %s729_s9 = smov [#allocation2]  }
   0x3   :  { %s15_s10 = sshll.u32 %s729_s9, 4  ;;  %s16_s10 = int_to_ptr.vmem [resolvable:$true] %s15_s10 }
   0x4   :  { %s671_s11 = scalar_lea.vmem %s16_s10, 256  ;;  %p676_p1 = scmp.lt.s32.totalorder %s16_s10, %s16_s10 }
   0x5   :  { %p672_p0 = scmp.ne.s32.totalorder %s16_s10, %s671_s11  ;;  %p677_p2 = scmp.lt.s32.totalorder %s671_s11, %s671_s11 }
   0x7   :  { %p678_p3 = por %p677_p2, %p676_p1 }
   0x9   :  { %p679_p4 = pnand %p678_p3, %p672_p0 }
   0xb   :  { %682 = shalt.err (!%p679_p4)
}
   0xc   :  { %s730_s12 = smov 128   ;;  %s731_s13 = smov 8  }
   0xd   :  { %21 = dma.hbm_to_vmem [thread:$0]  %s789_s0, 256, %s16_s10, [#allocation3], %s730_s12, %s730_s12, %s731_s13  }
   0xe   :  { %s732_s16 = smov [#allocation5]  }
   0xf   :  { %s27_s17 = sshll.u32 %s732_s16, 4  ;;  %s28_s17 = int_to_ptr.vmem [resolvable:$true] %s27_s17 }
  0x10   :  { %s691_s18 = scalar_lea.vmem %s28_s17, 3456  ;;  %p696_p6 = scmp.lt.s32.totalorder %s28_s17, %s28_s17 }
  0x11   :  { %p692_p5 = scmp.ne.s32.totalorder %s28_s17, %s691_s18  ;;  %p697_p7 = scmp.lt.s32.totalorder %s691_s18, %s691_s18 }
  0x13   :  { %p698_p8 = por %p697_p7, %p696_p6 }
  0x15   :  { %p699_p9 = pnand %p698_p8, %p692_p5 }
  0x17   :  { %702 = shalt.err (!%p699_p9)
}
  0x18   :  { %s733_s19 = smov 384   ;;  %s734_s20 = smov 24  }
  0x19   :  { %33 = dma.hbm_to_vmem [thread:$0]  %s790_s1, 3456, %s28_s17, [#allocation6], %s733_s19, %s733_s19, %s734_s20  }
  0x1a   :  { %723 = dma.done.wait [#allocation3], 256  }
  0x1b   :  { %724 = vsyncadd [#allocation3], 4294967040 }
  0x1c   :  { %725 = dma.done.wait [#allocation6], 3456  }
  0x1d   :  { %726 = vsyncadd [#allocation6], 4294963840  ;;  %v735_v0 = vmov 0.0   ;;  %v52_v1 = vld [vmem:[#allocation5 + $0x50] sm:$0xff]  ;;  %v51_v2 = vld [vmem:[#allocation5 + $0x48] sm:$0xff]  ;;  %vm69_vm0 = vcmask 261120  }
  0x1e   :  { %140 = vmatprep.mubr.f32.mxu0 %v735_v0  ;;  %613 = vmatprep.subr.mxu1 %v735_v0  ;;  %v49_v3 = vld [vmem:[#allocation5 + $0x38] sm:$0xff]  ;;  %v48_v4 = vld [vmem:[#allocation5 + $0x30] sm:$0xff]  ;;  %v46_v5 = vld [vmem:[#allocation5 + $0x20] sm:$0xff]  ;;  %vm736_vm1 = vmmov 0   ;;  %s737_s0 = smov 64   ;;  %vm156_vm2 = vcmask 523264  }
  0x1f   :  { %100 = vmatprep.subr.mxu0 %v52_v1  ;;  %v45_v6 = vld [vmem:[#allocation5 + $0x18] sm:$0xff]  ;;  %v43_v7 = vld [vmem:[#allocation5 + $0x8] sm:$0xff]  ;;  %v42_v8 = vld [vmem:[#allocation5] sm:$0xff]  ;;  %615 = vmatprep.mubr.msk.f32.mxu1 %vm736_vm1, %v735_v0  ;;  %vm310_vm3 = vcmask 64512   ;;  %s738_s1 = smov [#allocation7]  }
  0x20   :  { %101 = vmatpush1.msra.mxu0 %v51_v2  ;;  %v40_v9 = vld [vmem:[#allocation2] sm:$0xff]  ;;  %v41_v10 = vld [vmem:[#allocation2 + $0x8] sm:$0xff]  ;;  %v577_v11 = vld [vmem:[#allocation5 + $0xc0] ss:$0 sm:$0xff]  ;;  %s564_s23 = sshll.u32 %s738_s1, 4  ;;  %s565_s23 = int_to_ptr.vmem [resolvable:$true] %s564_s23 }
  0x21   :  { %102 = vmatprep.subr.mxu0 %v49_v3  ;;  %v578_v19 = vld [vmem:[#allocation5 + $0xc8] ss:$0 sm:$0xff]  ;;  %v57_v23 = vld [vmem:[#allocation5 + $0xb8] sm:$0xff]  ;;  %v56_v45 = vld [vmem:[#allocation5 + $0xa0] sm:$0xff]  ;;  %s703_s24 = scalar_lea.vmem %s565_s23, 256  ;;  %p708_p11 = scmp.lt.s32.totalorder %s565_s23, %s565_s23 }
  0x22   :  { %103 = vmatpush1.msra.mxu0 %v48_v4  ;;  %v55_v46 = vld [vmem:[#allocation5 + $0x88] sm:$0xff]  ;;  %v54_v47 = vld [vmem:[#allocation5 + $0x70] sm:$0xff]  ;;  %v53_v48 = vld [vmem:[#allocation5 + $0x58] sm:$0xff]  ;;  %p704_p10 = scmp.ne.s32.totalorder %s565_s23, %s703_s24  ;;  %p709_p12 = scmp.lt.s32.totalorder %s703_s24, %s703_s24 }
  0x23   :  { %104 = vmatprep.subr.mxu0 %v46_v5  ;;  %v50_v49 = vld [vmem:[#allocation5 + $0x40] sm:$0xff]  ;;  %v47_v50 = vld [vmem:[#allocation5 + $0x28] sm:$0xff]  ;;  %v44_v51 = vld [vmem:[#allocation5 + $0x10] sm:$0xff] }
  0x24   :  { %105 = vmatpush1.msra.mxu0 %v45_v6  ;;  %v587_v56 = vld [vmem:[#allocation5 + $0xd0] ss:$0 sm:$0xff]  ;;  %p710_p13 = por %p709_p12, %p708_p11 }
  0x25   :  { %106 = vmatprep.subr.mxu0 %v43_v7 }
  0x26   :  { %107 = vmatpush1.msra.mxu0 %v42_v8  ;;  %p711_p0 = pnand %p710_p13, %p704_p10 }
  0x27   :  { %579 = vmatmul.mubr.msk.f32.vlgmr.msra.gmra.mxu0 %vm69_vm0, %v40_v9  ;;  %608 = vmatprep.subr.mxu0 %v735_v0 }
  0x28   :  { %146 = vmatprep.mubr.f32.mxu0 %v735_v0 }
  0x2b   :  { %580 = vmatmul.mubr.msk.f32.gmra.mxu0 %vm69_vm0, %v41_v10 }
  0x2c   :  { %610 = vmatprep.mubr.msk.f32.mxu0 %vm736_vm1, %v735_v0 }
  0xe7   :  { %v142_v12 = vpop.f32.mrf.mxu0 }
  0xe8   :  { %v143_v13 = vadd.f32 %v577_v11, %v142_v12 }
  0xe9   :  { %v144_v14 = vpop.f32.mrf.mxu0 }
  0xea   :  { %154 = vrot.lane.b32.xlu0 %v143_v13, %s737_s0  ;;  %v145_v22 = vadd.f32 %v578_v19, %v144_v14 }
  0xeb   :  { %v148_v15 = vpop.f32.mrf.mxu0 }
  0xec   :  { %v149_v16 = vadd.f32 %v577_v11, %v148_v15 }
  0xed   :  { %v150_v17 = vpop.f32.mrf.mxu0 }
  0xee   :  { %232 = vrot.lane.b32.xlu0 %v149_v16, %s737_s0  ;;  %v151_v20 = vadd.f32 %v578_v19, %v150_v17 }
 0x15c   :  { %v155_v18 = vpop.permute.xlu0 %154 }
 0x15d   :  { %609 = vmatpush3.xpose.msk.msra.mxu0 %vm156_vm2, %v155_v18 }
 0x15e   :  { %623 = vmatprep.subr.mxu0 %v735_v0 }
 0x160   :  { %611 = vmatmul.mubr.msk.f32.vlgmr.msra.gmra.mxu0 %vm156_vm2, %v143_v13  ;;  %v233_v21 = vpop.permute.xlu0 %232 }
 0x161   :  { %614 = vmatpush3.xpose.msk.msra.mxu1 %vm156_vm2, %v233_v21  ;;  %624 = vmatpush3.msra.mxu0 %v151_v20 }
 0x162   :  { %618 = vmatprep.subr.mxu1 %v735_v0  ;;  %625 = vmatprep.mubr.msk.f32.mxu0 %vm736_vm1, %v735_v0 }
 0x164   :  { %616 = vmatmul.mubr.msk.f32.vlgmr.msra.gmra.mxu1 %vm156_vm2, %v149_v16 }
 0x165   :  { %619 = vmatpush3.msra.mxu1 %v145_v22  ;;  %620 = vmatprep.mubr.msk.f32.mxu1 %vm736_vm1, %v735_v0 }
 0x166   :  { %628 = vmatprep.subr.mxu1 %v57_v23 }
 0x220   :  { %v227_v24 = vpop.f32.mrf.mxu0 }
 0x221   :  { %v308_v26 = vmul.f32 0.125, %v227_v24 }
 0x222   :  { %v612_v25 = vpop.f32.mrf.mxu0 }
 0x223   :  { %v311_v30 = vsel %vm310_vm3, %v308_v26, -inf }
 0x224   :  { %v304_v27 = vpop.f32.mrf.mxu1 }
 0x225   :  { %v309_v28 = vmul.f32 0.125, %v304_v27 }
 0x226   :  { %v617_v29 = vpop.f32.mrf.mxu1 }
 0x227   :  { %v312_v31 = vsel %vm310_vm3, %v309_v28, -inf }
 0x228   :  { %v313_v32 = vmax.f32 %v311_v30, %v312_v31 }
 0x22a   :  { %v314_v33 = vsub.f32 %v308_v26, %v313_v32  ;;  %v315_v34 = vsub.f32 %v309_v28, %v313_v32 }
 0x22c   :  { %v316_v35 = vmul.f32 1.442695, %v314_v33  ;;  %v318_v36 = vmul.f32 1.442695, %v315_v34 }
 0x22e   :  { %657 = vpow2.f32 %v316_v35 }
 0x22f   :  { %659 = vpow2.f32 %v318_v36 }
 0x23b   :  { %v658_v37 = vpop.eup %657 }
 0x23c   :  { %v660_v38 = vpop.eup %659  ;;  %v320_v39 = vsel %vm310_vm3, %v658_v37, 0.0 }
 0x23d   :  { %v321_v40 = vsel %vm310_vm3, %v660_v38, 0.0 }
 0x23e   :  { %v322_v41 = vadd.f32 %v321_v40, %v320_v39 }
 0x240   :  { %661 = vrcp.f32 %v322_v41 }
 0x24d   :  { %v662_v42 = vpop.eup %661 }
 0x24e   :  { %v324_v43 = vmul.f32 %v662_v42, %v658_v37  ;;  %v325_v44 = vmul.f32 %v662_v42, %v660_v38 }
 0x250   :  { %621 = vmatmul.mubr.msk.f32.vlgmr.msra.gmra.mxu1 %vm310_vm3, %v324_v43  ;;  %626 = vmatmul.mubr.msk.f32.vlgmr.msra.gmra.mxu0 %vm310_vm3, %v325_v44 }
 0x251   :  { %629 = vmatpush3.msra.mxu1 %v57_v23 }
 0x252   :  { %630 = vmatprep.subr.mxu1 %v56_v45 }
 0x253   :  { %631 = vmatpush3.msra.mxu1 %v56_v45 }
 0x254   :  { %632 = vmatprep.subr.mxu1 %v55_v46 }
 0x255   :  { %633 = vmatpush3.msra.mxu1 %v55_v46 }
 0x256   :  { %634 = vmatprep.subr.mxu1 %v54_v47 }
 0x257   :  { %635 = vmatpush3.msra.mxu1 %v54_v47 }
 0x258   :  { %636 = vmatprep.subr.mxu1 %v53_v48 }
 0x259   :  { %637 = vmatpush3.msra.mxu1 %v53_v48 }
 0x25a   :  { %638 = vmatprep.subr.mxu1 %v50_v49 }
 0x25b   :  { %639 = vmatpush3.msra.mxu1 %v50_v49 }
 0x25c   :  { %640 = vmatprep.subr.mxu1 %v47_v50 }
 0x25d   :  { %641 = vmatpush3.msra.mxu1 %v47_v50 }
 0x25e   :  { %642 = vmatprep.subr.mxu1 %v44_v51 }
 0x25f   :  { %643 = vmatpush3.msra.mxu1 %v44_v51 }
 0x310   :  { %v395_v52 = vpop.f32.mrf.mxu1  ;;  %v468_v53 = vpop.f32.mrf.mxu0 }
 0x311   :  { %644 = vmatprep.mubr.msk.f32.mxu1 %vm156_vm2, %v395_v52 }
 0x312   :  { %v622_v54 = vpop.f32.mrf.mxu1  ;;  %v627_v55 = vpop.f32.mrf.mxu0  ;;  %645 = vmatmul.mubr.msk.f32.vlgmr.msra.gmra.mxu1 %vm156_vm2, %v468_v53 }
 0x3d2   :  { %v646_v57 = vpop.f32.mrf.mxu1 }
 0x3d3   :  { %v554_v58 = vadd.f32 %v646_v57, %v587_v56 }
 0x3d4   :  { %v548_v59 = vpop.f32.mrf.mxu1 }
 0x3d5   :  { %558 = vst.msk [vmem:[#allocation7 + $0x8] sm:$0xff] %vm69_vm0, %v554_v58  ;;  %v549_v60 = vadd.f32 %v587_v56, %v548_v59 }
 0x3d7   :  { %557 = vst.msk [vmem:[#allocation7] sm:$0xff] %vm69_vm0, %v549_v60 }
 0x3d8   :  { %714 = shalt.err (!%p711_p0)
}
 0x3d9   :  { %570 = dma.vmem_to_hbm [thread:$0]  %s565_s23, 256, %s791_s2, [#allocation4], %s730_s12, %s730_s12, %s731_s13  }
 0x3da   :  { %727 = dma.done.wait [#allocation4], 256  }
 0x3db   :  { %728 = vsyncadd [#allocation4], 4294967040 }
 0x3dc   :  { %574 = vsyncpa [#allocation3], 1 }
 0x3dd   :  { %575 = vsyncpa [#allocation6], 1 }
 0x3de   :  { %576 = vsyncpa [#allocation4], 1 }

</bundles_post_ra>
